<compile_context>
chip_gen: v6e
topology: v6e:2x2x1
jax: 0.10.0
libtpu: 0.0.40
codegen_flags: <defaults>
</compile_context>

<pallas_src>
import functools

import jax
import jax.numpy as jnp
import numpy as np
from jax.experimental import pallas as pl
from jax.experimental.pallas import tpu as pltpu

_BN_EPS = 1e-5
_ACC_BYTES = 512 * 1024             # f32 accumulator budget per (tm, tn) tile
_W_BLOCK_BYTES = 8 * 1024 * 1024    # bf16 weight-block budget per Cout tile
_VMEM_LIMIT = 48 * 1024 * 1024      # fits v7x's 64 MiB/TC; ample margin on v5e/v6e


def _round_up(x, m):
    return (x + m - 1) // m * m


def _cdiv(a, b):
    return (a + b - 1) // b


# ----------------------------------------------------------------------------
# Pallas kernel: sum-of-taps GEMM + per-channel affine + activation
# ----------------------------------------------------------------------------
def _conv_gemm_kernel(z_ref, w_ref, scale_ref, shift_ref, o_ref, *,
                      tap_offsets, activation, tm):
    """z_ref: (Mz, K) bf16 whole feature map, VMEM-resident (single-buffered).
    w_ref: (P, T, K, tn) bf16 weight block.  scale/shift: (1, tn) f32.
    o_ref: (P, tm, tn): out[p, m] = act((sum_t z[m+off[p][t]] @ w[p, t]) * s + b)."""
    m0 = pl.multiple_of(pl.program_id(0) * tm, 8)
    scale = scale_ref[...]                    # hoisted out of the phase loop
    shift = shift_ref[...]
    for p, offs in enumerate(tap_offsets):
        acc = None
        for t, off in enumerate(offs):
            start = m0 + off
            if off % 8 == 0:                  # folded layers: always sublane aligned
                start = pl.multiple_of(start, 8)
            part = jnp.dot(z_ref[pl.ds(start, tm), :], w_ref[p, t],
                           preferred_element_type=jnp.float32)
            acc = part if acc is None else acc + part
        y = acc * scale + shift
        if activation == "leaky_relu":
            y = jnp.where(y > 0, y, 0.2 * y)
        elif activation == "relu":
            y = jnp.maximum(y, 0.0)
        elif activation == "tanh":
            y = jnp.tanh(y)
        o_ref[p] = y.astype(o_ref.dtype)


def _resident_spec(shape):
    """Whole-array block, constant index map -> DMA'd into VMEM exactly once.
    Single-buffered (pl.Buffered(1)) to free VMEM headroom on v7x; falls back to the
    default double buffer if this JAX build lacks the pipeline_mode knob."""
    try:
        return pl.BlockSpec(shape, lambda i, j: (0, 0), pipeline_mode=pl.Buffered(1))
    except (TypeError, AttributeError):
        return pl.BlockSpec(shape, lambda i, j: (0, 0))


def _fused_tap_gemm(zc, wk, scale, shift, tap_offsets, mo, activation, out_dtype):
    """out[p, m, :] for m < mo;  zc (Mz, K) bf16, wk (P, T, K, Np) bf16."""
    n_ph, n_tap, kc, n_p = wk.shape
    n_real = scale.shape[1]
    if n_real < n_p:                 # zero-pad the affine: padded lanes -> act(0) = 0
        scale = jnp.pad(scale, ((0, 0), (0, n_p - n_real)))
        shift = jnp.pad(shift, ((0, 0), (0, n_p - n_real)))
    max_off = max(max(t) for t in tap_offsets)

    # ---- per-layer tile selection -------------------------------------------
    tn = n_p
    w_bytes_per_oc = n_ph * n_tap * kc * 2
    while tn > 128 and w_bytes_per_oc * tn > _W_BLOCK_BYTES:
        tn //= 2
    tm_max = max(128, min(1024, _ACC_BYTES // (4 * tn)))
    if mo <= tm_max:
        nb_m, tm = 1, _round_up(mo, 8)
    else:
        nb_m = _cdiv(mo, tm_max)
        tm = _round_up(_cdiv(mo, nb_m), 8)
    mo_p = nb_m * tm
    nb_n = n_p // tn

    # ---- pad the flattened input so every tap read stays in bounds ----------
    need_rows = mo_p + max_off + 8
    if zc.shape[0] < need_rows:
        zc = jnp.pad(zc, ((0, need_rows - zc.shape[0]), (0, 0)))

    out = pl.pallas_call(
        functools.partial(_conv_gemm_kernel, tap_offsets=tap_offsets,
                          activation=activation, tm=tm),
        out_shape=jax.ShapeDtypeStruct((n_ph, mo_p, n_p), out_dtype),
        grid_spec=pltpu.PrefetchScalarGridSpec(
            num_scalar_prefetch=0,
            grid=(nb_m, nb_n),        # long M axis leads (megacore split on v7x)
            in_specs=[
                _resident_spec(zc.shape),
                pl.BlockSpec((n_ph, n_tap, kc, tn), lambda i, j: (0, 0, 0, j)),
                pl.BlockSpec((1, tn), lambda i, j: (0, j)),
                pl.BlockSpec((1, tn), lambda i, j: (0, j)),
            ],
            out_specs=pl.BlockSpec((n_ph, tm, tn), lambda i, j: (0, i, j)),
        ),
        compiler_params=pltpu.CompilerParams(
            dimension_semantics=("parallel", "parallel"),
            vmem_limit_bytes=_VMEM_LIMIT,
        ),
    )(zc, wk, scale, shift)
    return out[:, :mo, :]


# ----------------------------------------------------------------------------
# Conv / ConvTranspose wrappers (batched NHWC, bf16)
# ----------------------------------------------------------------------------
def encoder_conv(x, layer, activation):
    """4x4 stride-2 pad-1 Conv2d (+ folded BN) + activation.  x: (B, H, W, Cin)."""
    b, h, w, cin = x.shape
    wk, scale, shift = layer["wk"], layer["scale"], layer["shift"]
    cout = scale.shape[1]
    fold_rows = wk.shape[1] == 1
    ho, wo = h // 2, w // 2

    extra = (-(w + 2)) % 16           # make the space-to-depth cell width 8-aligned
    xp = jnp.pad(x, ((0, 0), (1, 1), (1, 1 + extra), (0, 0)))
    hz, wz = (h + 2) // 2, (w + 2 + extra) // 2
    # space-to-depth(2): cell (I, J) channel order (p, q, c)
    zf = (xp.reshape(b, hz, 2, wz, 2, cin)
          .transpose(0, 1, 3, 2, 4, 5).reshape(b * hz * wz, 4 * cin))
    if fold_rows:                     # enc1: both row taps folded into K = 16*cin
        zc = jnp.concatenate([zf[:-(wz + 1)], zf[1:-wz], zf[wz:-1], zf[wz + 1:]],
                             axis=1)  # channel order (a, b, p, q, c)
        taps = ((0,),)
    else:
        zc = jnp.concatenate([zf[:-1], zf[1:]], axis=1)   # channel order (b, p, q, c)
        taps = ((0, wz),)
    mo = b * hz * wz
    y = _fused_tap_gemm(zc, wk, scale, shift, taps, mo, activation, jnp.bfloat16)
    return y[0, :, :cout].reshape(b, hz, wz, cout)[:, :ho, :wo]


def decoder_conv(x, layer, activation, out_dtype=jnp.bfloat16):
    """4x4 stride-2 pad-1 ConvTranspose2d (+ folded BN) + activation, sub-pixel form."""
    b, h, w, cin = x.shape
    wk, scale, shift = layer["wk"], layer["scale"], layer["shift"]
    fold = wk.shape[0] == 1           # phases folded into the lane axis

    extra = (-(w + 2)) % 8
    xp = jnp.pad(x, ((0, 0), (1, 1), (1, 1 + extra), (0, 0)))
    hz, wz = h + 2, w + 2 + extra
    zf = xp.reshape(b * hz * wz, cin)
    mo = b * hz * wz

    if fold:
        cout = scale.shape[1] // 4
        # K = 3*cin holds columns x, x+1, x+2 -> rx registration lives in the weights
        zc = jnp.concatenate([zf[:-2], zf[1:-1], zf[2:]], axis=1)
        taps = ((0, wz, 2 * wz),)                       # all sublane-aligned
        y = _fused_tap_gemm(zc, wk, scale, shift, taps, mo, activation, out_dtype)
        y = y[0, :, :4 * cout].reshape(b, hz, wz, 2, 2, cout)[:, :h, :w]
        y = y.transpose(0, 1, 3, 2, 4, 5).reshape(b, 2 * h, 2 * w, cout)
    else:
        cout = scale.shape[1]
        zc = jnp.concatenate([zf[:-1], zf[1:]], axis=1)  # channel order (dxp, c)
        taps = tuple(tuple((ry + dyp) * wz + rx for dyp in range(2))
                     for ry in range(2) for rx in range(2))   # phase order ry-major
        y = _fused_tap_gemm(zc, wk, scale, shift, taps, mo, activation, out_dtype)
        y = y[:, :, :cout].reshape(2, 2, b, hz, wz, cout)[:, :, :, :h, :w]
        y = y.transpose(2, 3, 0, 4, 1, 5).reshape(b, 2 * h, 2 * w, cout)
    return y


# ----------------------------------------------------------------------------
# Parameter packing (PyTorch weight conventions)
# ----------------------------------------------------------------------------
def _fold_bn_affine(bias, gamma, beta):
    if gamma is None:
        return jnp.ones_like(bias), bias
    scale = gamma / jnp.sqrt(1.0 + _BN_EPS)   # eval mode: running_mean=0, running_var=1
    return scale, beta + bias * scale


def _pack_encoder_weight(w, cin, cout, fold_rows):
    # torch Conv2d weight (cout, cin, 4, 4); ky = 2a + p, kx = 2b + q
    coutp = _round_up(cout, 128)
    w6 = w.reshape(cout, cin, 2, 2, 2, 2)              # (co, c, a, p, b, q)
    wk = w6.transpose(2, 4, 3, 5, 1, 0)                # (a, b, p, q, c, co)
    if fold_rows:
        wk = wk.reshape(1, 16 * cin, cout)             # K order (a, b, p, q, c)
    else:
        wk = wk.reshape(2, 8 * cin, cout)              # tap = a, K order (b, p, q, c)
    wk = jnp.pad(wk, ((0, 0), (0, 0), (0, coutp - cout)))
    return wk[None].astype(jnp.bfloat16)               # (1, T, K, coutp)


def _pack_decoder_weight(w, cin, cout):
    # unfolded: torch ConvTranspose2d weight (cin, cout, 4, 4) -> (4, 2, 2*cin, coutp)
    coutp = _round_up(cout, 128)
    phases = []
    for ry in range(2):
        for rx in range(2):
            taps = []
            for dyp in range(2):
                parts = [w[:, :, 3 - ry - 2 * dyp, 3 - rx - 2 * dxp]
                         for dxp in range(2)]           # (cin, cout) each
                taps.append(jnp.concatenate(parts, axis=0))
            phases.append(jnp.stack(taps, axis=0))
    wk = jnp.stack(phases, axis=0)                      # (4, 2, 2*cin, cout)
    wk = jnp.pad(wk, ((0, 0), (0, 0), (0, 0), (0, coutp - cout)))
    return wk.astype(jnp.bfloat16)


def _pack_decoder_weight_folded(w, cin, cout):
    # phases folded into N: (1, 3, 3*cin, round_up(4*cout, 128)), N order (ry, rx, co)
    nf = 4 * cout
    nfp = _round_up(nf, 128)
    wk = jnp.zeros((3, 3 * cin, nf), jnp.float32)
    for t in range(3):                 # tap row offset t*wz (xp row y + t)
        for g in range(3):             # zc column group (xp column x + g)
            for ry in range(2):
                if not 0 <= t - ry <= 1:
                    continue
                for rx in range(2):
                    if not 0 <= g - rx <= 1:
                        continue
                    ky = 3 + ry - 2 * t
                    kx = 3 + rx - 2 * g
                    wk = wk.at[t, g * cin:(g + 1) * cin,
                               (ry * 2 + rx) * cout:(ry * 2 + rx + 1) * cout
                               ].set(w[:, :, ky, kx])
    wk = jnp.pad(wk, ((0, 0), (0, 0), (0, nfp - nf)))
    return wk[None].astype(jnp.bfloat16)


def _make_encoder_layer(w, bias, gamma, beta, cin, cout):
    scale, shift = _fold_bn_affine(bias, gamma, beta)
    fold_rows = 16 * cin <= 128
    wk = _pack_encoder_weight(w, cin, cout, fold_rows)
    return {"wk": wk,
            "scale": scale.reshape(1, cout).astype(jnp.float32),
            "shift": shift.reshape(1, cout).astype(jnp.float32)}


def _make_decoder_layer(w, bias, gamma, beta, cin, cout):
    scale, shift = _fold_bn_affine(bias, gamma, beta)
    if cout < 128:                     # dec1 and the final output layer
        wk = _pack_decoder_weight_folded(w, cin, cout)
        scale = jnp.tile(scale.reshape(1, cout), (1, 4))
        shift = jnp.tile(shift.reshape(1, cout), (1, 4))
    else:
        wk = _pack_decoder_weight(w, cin, cout)
        scale = scale.reshape(1, cout)
        shift = shift.reshape(1, cout)
    return {"wk": wk,
            "scale": scale.astype(jnp.float32),
            "shift": shift.astype(jnp.float32)}


def _conv_layer_params(key, cin, cout, bn, transposed):
    k1, k2, k3, k4 = jax.random.split(key, 4)
    shape = (cin, cout, 4, 4) if transposed else (cout, cin, 4, 4)
    w = 0.02 * jax.random.normal(k1, shape, jnp.float32)
    bias = 0.02 * jax.random.normal(k2, (cout,), jnp.float32)
    if bn:
        gamma = 1.0 + 0.02 * jax.random.normal(k3, (cout,), jnp.float32)
        beta = 0.02 * jax.random.normal(k4, (cout,), jnp.float32)
    else:
        gamma = beta = None
    if transposed:
        return _make_decoder_layer(w, bias, gamma, beta, cin, cout)
    return _make_encoder_layer(w, bias, gamma, beta, cin, cout)


def make_params(key, in_channel=1, out_channel=3):
    keys = jax.random.split(key, 16)
    p = {}
    enc = [(in_channel, 64, False), (64, 128, True), (128, 256, True),
           (256, 512, True), (512, 512, True), (512, 512, True), (512, 512, True)]
    for i, (ci, co, bn) in enumerate(enc):
        p[f"enc{i + 1}"] = _conv_layer_params(keys[i], ci, co, bn, transposed=False)
    p["bottleneck"] = _conv_layer_params(keys[7], 512, 512, False, transposed=False)
    dec = [("dec7", 512, 512), ("dec6", 1024, 512), ("dec5", 1024, 512),
           ("dec4", 1024, 512), ("dec3", 1024, 256), ("dec2", 512, 128),
           ("dec1", 256, 64)]
    for i, (name, ci, co) in enumerate(dec):
        p[name] = _conv_layer_params(keys[8 + i], ci, co, True, transposed=True)
    p["out"] = _conv_layer_params(keys[15], 128, out_channel, False, transposed=True)
    return p


# ----------------------------------------------------------------------------
# Forward pass (mirrors UNetGenerator.forward); batch folded into the GEMM M axis
# ----------------------------------------------------------------------------
def unet_forward(params, x):
    """x: (N, Cin, H, W) float32 (NCHW) -> (N, out_ch, H, W) float32."""
    h = x.transpose(0, 2, 3, 1).astype(jnp.bfloat16)
    skips = []
    for i in range(7):
        h = encoder_conv(h, params[f"enc{i + 1}"], "leaky_relu")
        skips.append(h)
    d = encoder_conv(skips[-1], params["bottleneck"], "relu")
    # TODO(synk): Dropout(0.5) in decode7/6/5 is the eval-mode identity here.
    for name, skip in zip(("dec7", "dec6", "dec5", "dec4", "dec3", "dec2", "dec1"),
                          reversed(skips)):
        up = decoder_conv(d, params[name], "relu")
        d = jnp.concatenate([up, skip], axis=-1)        # skip_connection (channels)
    y = decoder_conv(d, params["out"], "tanh", jnp.bfloat16)
    return y.astype(jnp.float32).transpose(0, 3, 1, 2)


# ----------------------------------------------------------------------------
# Self-check of the conv building blocks against lax.conv references
# ----------------------------------------------------------------------------
_ACTS = {"leaky_relu": lambda y: jnp.where(y > 0, y, 0.2 * y),
         "relu": lambda y: jnp.maximum(y, 0.0),
         "tanh": jnp.tanh}


def _self_check():
    key = jax.random.PRNGKey(42)

    def assert_close(a, b, name):
        np.testing.assert_allclose(np.asarray(a, np.float32), np.asarray(b, np.float32),
                                   rtol=2e-2, atol=5e-3, err_msg=name)

    b, h, w = 2, 10, 14
    for idx, (cin, cout) in enumerate([(4, 8), (16, 8)]):   # folded / 2-tap encoders
        k1, k2, k3, k4, k5, key = jax.random.split(key, 6)
        x = jax.random.normal(k1, (b, h, w, cin), jnp.float32)
        wt = 0.2 * jax.random.normal(k2, (cout, cin, 4, 4), jnp.float32)
        bias = 0.2 * jax.random.normal(k3, (cout,), jnp.float32)
        gamma = 1.0 + 0.2 * jax.random.normal(k4, (cout,), jnp.float32)
        beta = 0.2 * jax.random.normal(k5, (cout,), jnp.float32)
        layer = _make_encoder_layer(wt, bias, gamma, beta, cin, cout)
        xb = x.astype(jnp.bfloat16)
        out = encoder_conv(xb, layer, "leaky_relu").astype(jnp.float32)
        scale, shift = _fold_bn_affine(bias, gamma, beta)
        wt_q = wt.astype(jnp.bfloat16).astype(jnp.float32)
        ref = jax.lax.conv_general_dilated(
            xb.astype(jnp.float32), wt_q, (2, 2), [(1, 1), (1, 1)],
            dimension_numbers=("NHWC", "OIHW", "NHWC"))
        ref = _ACTS["leaky_relu"](ref * scale + shift)
        assert_close(out, ref, f"encoder case {idx}")

    hd, wd = 5, 7
    for idx, (cin, cout, act) in enumerate([(8, 8, "relu"), (8, 128, "tanh")]):
        k1, k2, k3, k4, k5, key = jax.random.split(key, 6)
        x = jax.random.normal(k1, (b, hd, wd, cin), jnp.float32)
        wt = 0.2 * jax.random.normal(k2, (cin, cout, 4, 4), jnp.float32)
        bias = 0.2 * jax.random.normal(k3, (cout,), jnp.float32)
        gamma = 1.0 + 0.2 * jax.random.normal(k4, (cout,), jnp.float32)
        beta = 0.2 * jax.random.normal(k5, (cout,), jnp.float32)
        layer = _make_decoder_layer(wt, bias, gamma, beta, cin, cout)
        xb = x.astype(jnp.bfloat16)
        out = decoder_conv(xb, layer, act).astype(jnp.float32)
        scale, shift = _fold_bn_affine(bias, gamma, beta)
        wt_q = wt.astype(jnp.bfloat16).astype(jnp.float32)
        wc = jnp.flip(wt_q, (2, 3)).transpose(1, 0, 2, 3)     # ConvT == dilated conv
        ref = jax.lax.conv_general_dilated(
            xb.astype(jnp.float32), wc, (1, 1), [(2, 2), (2, 2)],
            lhs_dilation=(2, 2), dimension_numbers=("NHWC", "OIHW", "NHWC"))
        ref = _ACTS[act](ref * scale + shift)
        assert_close(out, ref, f"decoder case {idx}")


# ----------------------------------------------------------------------------
if __name__ == "__main__":
    _self_check()    # validates the sub-pixel ConvTranspose / s2d Conv registrations

    key = jax.random.PRNGKey(0)
    pkey, xkey = jax.random.split(key)
    params = make_params(pkey, in_channel=1, out_channel=3)

    # the 7 stride-2 encoders + bottleneck require a 256x256 input (smallest valid)
    x = jax.random.normal(xkey, (1, 1, 256, 256), jnp.float32)

    y = jax.jit(unet_forward)(params, x)
    y = jax.block_until_ready(y)
    assert y.shape == (1, 3, 256, 256), y.shape
    assert bool(jnp.all(jnp.isfinite(y)))
    print("KERNEL_OK")
</pallas_src>

<mosaic_0001>
module attributes {stable_mosaic.version = 11 : i64} {
  func.func @_conv_gemm_kernel(%arg0: i32, %arg1: i32, %arg2: memref<104x64xbf16, #tpu.memory_space<vmem>>, %arg3: memref<1x1x64x128xbf16, #tpu.memory_space<vmem>>, %arg4: memref<1x128xf32, #tpu.memory_space<vmem>>, %arg5: memref<1x128xf32, #tpu.memory_space<vmem>>, %arg6: memref<1x96x128xbf16, #tpu.memory_space<vmem>>) attributes {dimension_semantics = [#tpu.dimension_semantics<parallel>, #tpu.dimension_semantics<parallel>], iteration_bounds = array<i64: 1, 1>, scalar_prefetch = 0 : i64, scratch_operands = 0 : i64, tpu.core_type = #tpu.core_type<tc>, window_params = [{pipeline_mode = #tpu.pipeline_mode<synchronous>, transform_indices = @transform_0, window_bounds = array<i64: 104, 64>}, {transform_indices = @transform_1, window_bounds = array<i64: 1, 1, 64, 128>}, {transform_indices = @transform_2, window_bounds = array<i64: 1, 128>}, {transform_indices = @transform_3, window_bounds = array<i64: 1, 128>}, {transform_indices = @transform_4, window_bounds = array<i64: 1, 96, 128>}]} {
    %c96_i32 = arith.constant 96 : i32
    %0 = arith.muli %arg0, %c96_i32 : i32
    %1 = tpu.assume_multiple %0, 8 : i32
    %c0 = arith.constant 0 : index
    %c0_0 = arith.constant 0 : index
    %2 = vector.load %arg4[%c0, %c0_0] : memref<1x128xf32, #tpu.memory_space<vmem>>, vector<1x128xf32>
    %c0_1 = arith.constant 0 : index
    %c0_2 = arith.constant 0 : index
    %3 = vector.load %arg5[%c0_1, %c0_2] : memref<1x128xf32, #tpu.memory_space<vmem>>, vector<1x128xf32>
    %c0_i32 = arith.constant 0 : i32
    %4 = arith.addi %1, %c0_i32 : i32
    %5 = tpu.assume_multiple %4, 8 : i32
    %6 = arith.index_cast %5 : i32 to index
    %c0_3 = arith.constant 0 : index
    %7 = vector.load %arg2[%6, %c0_3] : memref<104x64xbf16, #tpu.memory_space<vmem>>, vector<96x64xbf16>
    %c0_4 = arith.constant 0 : index
    %c0_5 = arith.constant 0 : index
    %c0_6 = arith.constant 0 : index
    %c0_7 = arith.constant 0 : index
    %8 = vector.load %arg3[%c0_4, %c0_5, %c0_6, %c0_7] : memref<1x1x64x128xbf16, #tpu.memory_space<vmem>>, vector<1x1x64x128xbf16>
    %9 = vector.shape_cast %8 : vector<1x1x64x128xbf16> to vector<64x128xbf16>
    %cst = arith.constant dense<0.000000e+00> : vector<96x128xf32>
    %10 = tpu.matmul %7, %9, %cst {dimension_numbers = #tpu.dot_dimension_numbers<[1], [0], [0], [1], [0, 0, 1, 1], [], []>} : vector<96x64xbf16>, vector<64x128xbf16>, vector<96x128xf32> -> vector<96x128xf32>
    %11 = vector.broadcast %2 : vector<1x128xf32> to vector<96x128xf32>
    %12 = arith.mulf %10, %11 : vector<96x128xf32>
    %13 = vector.broadcast %3 : vector<1x128xf32> to vector<96x128xf32>
    %14 = arith.addf %12, %13 : vector<96x128xf32>
    %cst_8 = arith.constant 0.000000e+00 : f32
    %15 = vector.broadcast %cst_8 : f32 to vector<96x128xf32>
    %16 = arith.cmpf ogt, %14, %15 : vector<96x128xf32>
    %cst_9 = arith.constant 2.000000e-01 : f32
    %17 = vector.broadcast %cst_9 : f32 to vector<96x128xf32>
    %18 = arith.mulf %17, %14 : vector<96x128xf32>
    %19 = arith.select %16, %14, %18 : vector<96x128xi1>, vector<96x128xf32>
    %20 = arith.truncf %19 : vector<96x128xf32> to vector<96x128xbf16>
    %c0_10 = arith.constant 0 : index
    %c0_11 = arith.constant 0 : index
    %c0_12 = arith.constant 0 : index
    %21 = vector.load %arg6[%c0_10, %c0_11, %c0_12] : memref<1x96x128xbf16, #tpu.memory_space<vmem>>, vector<1x96x128xbf16>
    %22 = vector.shape_cast %21 : vector<1x96x128xbf16> to vector<96x128xbf16>
    %23 = vector.shape_cast %20 : vector<96x128xbf16> to vector<1x96x128xbf16>
    tpu.vector_store %arg6[%c0_10, %c0_11, %c0_12], %23 {strides = array<i32>} : memref<1x96x128xbf16, #tpu.memory_space<vmem>>, vector<1x96x128xbf16>,
    return
  }
  func.func @transform_0(%arg0: i32, %arg1: i32) -> (i32, i32) {
    %c0_i32 = arith.constant 0 : i32
    %c0_i32_0 = arith.constant 0 : i32
    %c0_i32_1 = arith.constant 0 : i32
    return %c0_i32, %c0_i32_0 : i32, i32
  }
  func.func @transform_1(%arg0: i32, %arg1: i32) -> (i32, i32, i32, i32) {
    %c0_i32 = arith.constant 0 : i32
    %c0_i32_0 = arith.constant 0 : i32
    %c0_i32_1 = arith.constant 0 : i32
    %c0_i32_2 = arith.constant 0 : i32
    return %c0_i32, %c0_i32_0, %c0_i32_1, %arg1 : i32, i32, i32, i32
  }
  func.func @transform_2(%arg0: i32, %arg1: i32) -> (i32, i32) {
    %c0_i32 = arith.constant 0 : i32
    %c0_i32_0 = arith.constant 0 : i32
    return %c0_i32, %arg1 : i32, i32
  }
  func.func @transform_3(%arg0: i32, %arg1: i32) -> (i32, i32) {
    %c0_i32 = arith.constant 0 : i32
    %c0_i32_0 = arith.constant 0 : i32
    return %c0_i32, %arg1 : i32, i32
  }
  func.func @transform_4(%arg0: i32, %arg1: i32) -> (i32, i32, i32) {
    %c0_i32 = arith.constant 0 : i32
    %c0_i32_0 = arith.constant 0 : i32
    return %c0_i32, %arg0, %arg1 : i32, i32, i32
  }
}

</mosaic_0001>

<bundles_post_ra>
// kernel: tpu_custom_call.1
= control target key start
LH: loop header
LB: loop body
LE: loop exit
PB: predicated region body
PF: predicated region fallthrough
CT: control target
= control target key end

     0   :  { %vm100_vm0 = vcmask 523264   ;;  %s601_s0 = inlined_call_operand.vmem [shape: bf16[104,64], index: 0, kind: input, shape index: {}]   ;;  %s602_s1 = inlined_call_operand.vmem [shape: bf16[1,1,64,128], index: 1, kind: input, shape index: {}]   ;;  %s603_s2 = inlined_call_operand.vmem [shape: f32[1,128], index: 2, kind: input, shape index: {}]   ;;  %s604_s3 = inlined_call_operand.vmem [shape: f32[1,128], index: 3, kind: input, shape index: {}]   ;;  %s605_s4 = inlined_call_operand.hbm [shape: bf16[1,96,128], index: 4, kind: output, shape index: {}]  }
   0x1   :  { %v468_v0 = vld [vmem:[%s602_s1 + $0x18] sm:$0xff]   ;;  %v469_v1 = vld [vmem:[%s602_s1 + $0x10] sm:$0xff]   ;;  %v470_v2 = vld [vmem:[%s602_s1 + $0x8] sm:$0xff]  }
   0x2   :  { %437 = vmatprep.subr.bf16.mxu0 %v468_v0  ;;  %457 = vmatprep.subr.bf16.mxu1 %v468_v0  ;;  %v472_v3 = vld [vmem:[%s601_s0] sm:$0xff]   ;;  %v473_v4 = vld [vmem:[%s601_s0 + $0x10] sm:$0xff]  }
   0x3   :  { %438 = vmatpush3.bf16.msra.mxu0 %v468_v0  ;;  %461 = vmatpush3.bf16.msra.mxu1 %v468_v0  ;;  %v471_v5 = vld [vmem:[%s602_s1] sm:$0xff]  }
   0x4   :  { %439 = vmatprep.subr.bf16.mxu0 %v469_v1  ;;  %458 = vmatprep.subr.bf16.mxu1 %v469_v1 }
   0x5   :  { %445 = vmatprep.mubr.msk.bf16.mxu0 %vm100_vm0, %v472_v3  ;;  %449 = vmatprep.mubr.msk.bf16.mxu1 %vm100_vm0, %v473_v4 }
   0x7   :  { %440 = vmatpush3.bf16.msra.mxu0 %v469_v1  ;;  %462 = vmatpush3.bf16.msra.mxu1 %v469_v1 }
   0x8   :  { %441 = vmatprep.subr.bf16.mxu0 %v470_v2  ;;  %459 = vmatprep.subr.bf16.mxu1 %v470_v2 }
   0x9   :  { %9 = vsyncpa [#allocation3], 0  ;;  %v474_v6 = vld [vmem:[%s601_s0 + $0x8] sm:$0xff]   ;;  %v475_v7 = vld [vmem:[%s601_s0 + $0x18] sm:$0xff]  }
   0xa   :  { %v476_v8 = vld [vmem:[%s601_s0 + $0x20] sm:$0xff]   ;;  %v477_v9 = vld [vmem:[%s601_s0 + $0x28] sm:$0xff]   ;;  %s500_s0 = smov [#allocation2]  }
   0xb   :  { %442 = vmatpush3.bf16.msra.mxu0 %v470_v2  ;;  %463 = vmatpush3.bf16.msra.mxu1 %v470_v2  ;;  %v567_v10 = vld [vmem:[%s603_s2] ss:$0 sm:$0xff]  ;;  %s337_s2 = sshll.u32 %s500_s0, 4  ;;  %s338_s2 = int_to_ptr.vmem [resolvable:$true] %s337_s2 }
   0xc   :  { %443 = vmatprep.subr.bf16.mxu0 %v471_v5  ;;  %460 = vmatprep.subr.bf16.mxu1 %v471_v5  ;;  %v572_v11 = vld [vmem:[%s604_s3] ss:$0 sm:$0xff]  ;;  %s478_s3 = scalar_lea.vmem %s338_s2, 768  ;;  %p483_p1 = scmp.lt.s32.totalorder %s338_s2, %s338_s2 }
   0xd   :  { %p479_p0 = scmp.ne.s32.totalorder %s338_s2, %s478_s3  ;;  %p484_p2 = scmp.lt.s32.totalorder %s478_s3, %s478_s3 }
   0xf   :  { %444 = vmatpush3.bf16.msra.mxu0 %v471_v5  ;;  %464 = vmatpush3.bf16.msra.mxu1 %v471_v5  ;;  %p485_p3 = por %p484_p2, %p483_p1 }
  0x11   :  { %p486_p4 = pnand %p485_p3, %p479_p0 }
  0x12   :  { %446 = vmatmul.mubr.msk.bf16.vlgmr.msra.gmra.mxu0 %vm100_vm0, %v474_v6  ;;  %450 = vmatmul.mubr.msk.bf16.vlgmr.msra.gmra.mxu1 %vm100_vm0, %v475_v7 }
  0x13   :  { %453 = vmatprep.mubr.msk.bf16.mxu1 %vm100_vm0, %v476_v8 }
  0x1a   :  { %454 = vmatmul.mubr.msk.bf16.gmra.mxu1 %vm100_vm0, %v477_v9 }
  0xd2   :  { %v447_v12 = vpop.f32.mrf.mxu0  ;;  %v451_v13 = vpop.f32.mrf.mxu1 }
  0xd3   :  { %v208_v14 = vmul.f32 %v447_v12, %v567_v10  ;;  %v212_v15 = vmul.f32 %v451_v13, %v567_v10 }
  0xd4   :  { %v153_v16 = vpop.f32.mrf.mxu0  ;;  %v169_v17 = vpop.f32.mrf.mxu1 }
  0xd5   :  { %v226_v18 = vadd.f32 %v572_v11, %v208_v14  ;;  %v230_v19 = vadd.f32 %v572_v11, %v212_v15  ;;  %v206_v20 = vmul.f32 %v567_v10, %v153_v16  ;;  %v210_v21 = vmul.f32 %v567_v10, %v169_v17 }
  0xd6   :  { %v448_v22 = vpop.f32.mrf.mxu0  ;;  %v452_v23 = vpop.f32.mrf.mxu1 }
  0xd7   :  { %vm238_vm1 = vcmp.gt.f32.partialorder %v226_v18, 0.0  ;;  %v250_v24 = vmul.f32 0.2, %v226_v18  ;;  %v254_v25 = vmul.f32 0.2, %v230_v19  ;;  %v224_v26 = vadd.f32 %v572_v11, %v206_v20 }
  0xd8   :  { %v228_v27 = vadd.f32 %v572_v11, %v210_v21  ;;  %v209_v28 = vmul.f32 %v448_v22, %v567_v10  ;;  %v213_v29 = vmul.f32 %v452_v23, %v567_v10  ;;  %v156_v30 = vpop.f32.mrf.mxu0  ;;  %v172_v31 = vpop.f32.mrf.mxu1  ;;  %vm242_vm2 = vcmp.gt.f32.partialorder %v230_v19, 0.0 }
  0xd9   :  { %v262_v32 = vsel %vm238_vm1, %v226_v18, %v250_v24  ;;  %v207_v33 = vmul.f32 %v567_v10, %v156_v30  ;;  %v211_v34 = vmul.f32 %v567_v10, %v172_v31  ;;  %vm236_vm3 = vcmp.gt.f32.partialorder %v224_v26, 0.0 }
  0xda   :  { %v248_v35 = vmul.f32 0.2, %v224_v26  ;;  %vm240_vm4 = vcmp.gt.f32.partialorder %v228_v27, 0.0  ;;  %v252_v36 = vmul.f32 0.2, %v228_v27  ;;  %v455_v37 = vpop.f32.mrf.mxu1  ;;  %v227_v38 = vadd.f32 %v572_v11, %v209_v28 }
  0xdb   :  { %v231_v39 = vadd.f32 %v572_v11, %v213_v29  ;;  %v225_v40 = vadd.f32 %v572_v11, %v207_v33  ;;  %v229_v41 = vadd.f32 %v572_v11, %v211_v34  ;;  %v266_v42 = vsel %vm242_vm2, %v230_v19, %v254_v25 }
  0xdc   :  { %v260_v43 = vsel %vm236_vm3, %v224_v26, %v248_v35  ;;  %v264_v44 = vsel %vm240_vm4, %v228_v27, %v252_v36  ;;  %v216_v45 = vmul.f32 %v455_v37, %v567_v10  ;;  %v185_v46 = vpop.f32.mrf.mxu1  ;;  %vm239_vm5 = vcmp.gt.f32.partialorder %v227_v38, 0.0 }
  0xdd   :  { %v251_v47 = vmul.f32 0.2, %v227_v38  ;;  %vm243_vm6 = vcmp.gt.f32.partialorder %v231_v39, 0.0  ;;  %v255_v48 = vmul.f32 0.2, %v231_v39  ;;  %vm237_vm7 = vcmp.gt.f32.partialorder %v225_v40, 0.0 }
  0xde   :  { %v249_v49 = vmul.f32 0.2, %v225_v40  ;;  %vm241_vm8 = vcmp.gt.f32.partialorder %v229_v41, 0.0  ;;  %v253_v50 = vmul.f32 0.2, %v229_v41  ;;  %v456_v51 = vpop.f32.mrf.mxu1  ;;  %v234_v54 = vadd.f32 %v572_v11, %v216_v45 }
  0xdf   :  { %v263_v52 = vsel %vm239_vm5, %v227_v38, %v251_v47  ;;  %v267_v53 = vsel %vm243_vm6, %v231_v39, %v255_v48  ;;  %v214_v55 = vmul.f32 %v567_v10, %v185_v46  ;;  %v217_v0 = vmul.f32 %v456_v51, %v567_v10 }
  0xe0   :  { %v400_v56 = vpack.c.bf16 %v263_v52, %v262_v32  ;;  %v410_v57 = vpack.c.bf16 %v267_v53, %v266_v42  ;;  %v261_v58 = vsel %vm237_vm7, %v225_v40, %v249_v49  ;;  %v265_v59 = vsel %vm241_vm8, %v229_v41, %v253_v50  ;;  %v188_v60 = vpop.f32.mrf.mxu1 }
  0xe1   :  { %v395_v61 = vpack.c.bf16 %v261_v58, %v260_v43  ;;  %v405_v62 = vpack.c.bf16 %v265_v59, %v264_v44  ;;  %v232_v63 = vadd.f32 %v572_v11, %v214_v55  ;;  %v215_v1 = vmul.f32 %v567_v10, %v188_v60 }
  0xe2   :  { %422 = vst [vmem:[#allocation2 + $0x8] sm:$0xff] %v400_v56   ;;  %424 = vst [vmem:[#allocation2 + $0x18] sm:$0xff] %v410_v57   ;;  %v258_v2 = vmul.f32 0.2, %v234_v54  ;;  %v235_v3 = vadd.f32 %v572_v11, %v217_v0  ;;  %vm246_vm9 = vcmp.gt.f32.partialorder %v234_v54, 0.0 }
  0xe3   :  { %396 = vst [vmem:[#allocation2] sm:$0xff] %v395_v61   ;;  %423 = vst [vmem:[#allocation2 + $0x10] sm:$0xff] %v405_v62   ;;  %v233_v4 = vadd.f32 %v572_v11, %v215_v1  ;;  %v256_v5 = vmul.f32 0.2, %v232_v63  ;;  %vm244_vm10 = vcmp.gt.f32.partialorder %v232_v63, 0.0 }
  0xe4   :  { %vm247_vm11 = vcmp.gt.f32.partialorder %v235_v3, 0.0  ;;  %v259_v6 = vmul.f32 0.2, %v235_v3  ;;  %v270_v8 = vsel %vm246_vm9, %v234_v54, %v258_v2 }
  0xe5   :  { %vm245_vm12 = vcmp.gt.f32.partialorder %v233_v4, 0.0  ;;  %v257_v7 = vmul.f32 0.2, %v233_v4  ;;  %v268_v12 = vsel %vm244_vm10, %v232_v63, %v256_v5 }
  0xe6   :  { %v271_v9 = vsel %vm247_vm11, %v235_v3, %v259_v6 }
  0xe7   :  { %v420_v10 = vpack.c.bf16 %v271_v9, %v270_v8  ;;  %v269_v13 = vsel %vm245_vm12, %v233_v4, %v257_v7 }
  0xe8   :  { %v415_v14 = vpack.c.bf16 %v269_v13, %v268_v12 }
  0xe9   :  { %426 = vst [vmem:[#allocation2 + $0x28] sm:$0xff] %v420_v10  }
  0xea   :  { %425 = vst [vmem:[#allocation2 + $0x20] sm:$0xff] %v415_v14  }
  0xeb   :  { %489 = shalt.err (!%p486_p4)
}
  0xec   :  { %s501_s12 = smov 64   ;;  %s502_s13 = smov 4  }
  0xed   :  { %343 = dma.vmem_to_hbm [thread:$0]  %s338_s2, 768, %s605_s4, [#allocation3], %s501_s12, %s501_s12, %s502_s13  }
  0xee   :  { %498 = dma.done.wait [#allocation3], 768  }
  0xef   :  { %499 = vsyncadd [#allocation3], 4294966528 }
  0xf0   :  { %347 = vsyncpa [#allocation3], 1 }

</bundles_post_ra>
